<compile_context>
chip_gen: v7x
topology: tpu7x:2x2x1
jax: 0.10.0
libtpu: 0.0.40
codegen_flags: <defaults>
</compile_context>

<pallas_src>
import math
import functools

import jax
import jax.numpy as jnp
from jax.experimental import pallas as pl
from jax.experimental.pallas import tpu as pltpu


def mha_kernel(q_ref, k_ref, v_ref, bias_ref,
               wq_ref, bq_ref, wk_ref, bk_ref,
               wv_ref, bv_ref, wp_ref, bp_ref,
               o_ref, ctx_ref, *, num_heads, head_dim, compute_dtype):
    B, S, E = q_ref.shape
    _, T, _ = k_ref.shape
    H, D = num_heads, head_dim

    # Flatten the batch block: projection GEMMs see M = B*S (resp. B*T) rows.
    xq = q_ref[...].reshape(B * S, E).astype(compute_dtype)
    xk = k_ref[...].reshape(B * T, E).astype(compute_dtype)
    xv = v_ref[...].reshape(B * T, E).astype(compute_dtype)

    # Linear projections on the MXU (bf16 inputs, f32 accumulation).
    # 1/sqrt(D) has already been folded into wq/bq by the wrapper.
    q = (jnp.dot(xq, wq_ref[...], preferred_element_type=jnp.float32)
         + bq_ref[...]).astype(compute_dtype)
    k = (jnp.dot(xk, wk_ref[...], preferred_element_type=jnp.float32)
         + bk_ref[...]).astype(compute_dtype)
    v = (jnp.dot(xv, wv_ref[...], preferred_element_type=jnp.float32)
         + bv_ref[...]).astype(compute_dtype)

    bias = bias_ref[...]  # (S, T) additive mask bias: 0 (keep) / -1e30 (masked)

    for h in range(H):  # static unroll over heads (H is small)
        lo = h * D
        hi = lo + D
        qh = q[:, lo:hi].reshape(B, S, D)
        kh = k[:, lo:hi].reshape(B, T, D)
        vh = v[:, lo:hi].reshape(B, T, D)

        # Contract head_dim directly — no explicit K transpose (XLU-free).
        scores = jnp.einsum("bsd,btd->bst", qh, kh,
                            preferred_element_type=jnp.float32)
        scores = scores + bias  # broadcast over the batch dim

        # numerically-stable softmax; reciprocal goes to the EUP slot.
        m = jnp.max(scores, axis=-1, keepdims=True)
        e = jnp.exp(scores - m)
        inv_l = pl.reciprocal(jnp.sum(e, axis=-1, keepdims=True), approx=True)
        p = (e * inv_l).astype(compute_dtype)

        # TODO(synk): attn_drop (Dropout p=0.1) is identity in eval mode;
        # training-mode stochastic dropout (pltpu.prng_*) is not implemented.

        ctx_h = jnp.einsum("bst,btd->bsd", p, vh,
                           preferred_element_type=jnp.float32)
        # Write this head's output straight into the scratch slab (no concat).
        ctx_ref[:, lo:hi] = ctx_h.reshape(B * S, D).astype(compute_dtype)

    out = (jnp.dot(ctx_ref[...], wp_ref[...],
                   preferred_element_type=jnp.float32) + bp_ref[...])
    o_ref[...] = out.reshape(B, S, E).astype(o_ref.dtype)


def _pick_block_batch(n, s, target_rows=256):
    """Smallest divisor of n whose row count fills the MXU; otherwise the whole
    batch (single grid step — the right call for tiny demo shapes)."""
    for d in range(1, n + 1):
        if n % d == 0 and d * s >= target_rows:
            return d
    return n


def multi_head_attention(query, key, value, params, attn_mask=None, *,
                         num_heads, block_batch=None,
                         compute_dtype=jnp.bfloat16):
    N, S, E = query.shape
    _, T, _ = key.shape
    assert E % num_heads == 0
    head_dim = E // num_heads

    if block_batch is None:
        block_batch = _pick_block_batch(N, S)
    assert N % block_batch == 0

    scale = 1.0 / math.sqrt(head_dim)

    # nn.Linear stores W as (out, in); pre-transpose so the kernel computes
    # x @ W^T + b.  Softmax scale folded into the Q projection; MXU operands
    # shipped as bf16 (accumulation stays f32 in-kernel).
    wq_t = (params["wq"].T * scale).astype(compute_dtype)
    wk_t = params["wk"].T.astype(compute_dtype)
    wv_t = params["wv"].T.astype(compute_dtype)
    wp_t = params["wp"].T.astype(compute_dtype)
    bq = (params["bq"] * scale).reshape(1, E).astype(jnp.float32)
    bk = params["bk"].reshape(1, E).astype(jnp.float32)
    bv = params["bv"].reshape(1, E).astype(jnp.float32)
    bp = params["bp"].reshape(1, E).astype(jnp.float32)

    # Additive mask bias: 0 where kept, -1e30 where masked (finite => no NaN
    # hazard; a single add per head instead of compare+select).
    if attn_mask is None:
        mask_bias = jnp.zeros((S, T), dtype=jnp.float32)
    else:
        mask_bias = jnp.where(attn_mask == 0, jnp.float32(-1e30),
                              jnp.float32(0.0))

    kernel = functools.partial(mha_kernel, num_heads=num_heads,
                               head_dim=head_dim, compute_dtype=compute_dtype)

    const2 = lambda b: (0, 0)
    w_itemsize = jnp.dtype(compute_dtype).itemsize

    # Rough double-buffered VMEM footprint (+margin for intermediates).
    block_bytes = (
        2 * (2 * block_batch * S * E + 2 * block_batch * T * E) * 4   # q,out,k,v
        + 2 * S * T * 4                                               # mask bias
        + 2 * 4 * E * E * w_itemsize                                  # weights
        + 2 * 4 * E * 4                                               # biases
        + block_batch * S * E * w_itemsize                            # ctx scratch
    )
    vmem_limit = int(min(100 * 2**20, max(32 * 2**20, 6 * block_bytes)))

    return pl.pallas_call(
        kernel,
        out_shape=jax.ShapeDtypeStruct((N, S, E), jnp.float32),
        grid=(N // block_batch,),
        in_specs=[
            pl.BlockSpec((block_batch, S, E), lambda b: (b, 0, 0)),  # query
            pl.BlockSpec((block_batch, T, E), lambda b: (b, 0, 0)),  # key
            pl.BlockSpec((block_batch, T, E), lambda b: (b, 0, 0)),  # value
            pl.BlockSpec((S, T), const2),                            # mask bias
            pl.BlockSpec((E, E), const2),                            # Wq^T (scaled)
            pl.BlockSpec((1, E), const2),                            # bq (scaled)
            pl.BlockSpec((E, E), const2),                            # Wk^T
            pl.BlockSpec((1, E), const2),                            # bk
            pl.BlockSpec((E, E), const2),                            # Wv^T
            pl.BlockSpec((1, E), const2),                            # bv
            pl.BlockSpec((E, E), const2),                            # Wproj^T
            pl.BlockSpec((1, E), const2),                            # bproj
        ],
        out_specs=pl.BlockSpec((block_batch, S, E), lambda b: (b, 0, 0)),
        scratch_shapes=[pltpu.VMEM((block_batch * S, E), compute_dtype)],
        compiler_params=pltpu.CompilerParams(
            dimension_semantics=("parallel",),
            vmem_limit_bytes=vmem_limit),
    )(query.astype(compute_dtype), key.astype(compute_dtype),
      value.astype(compute_dtype), mask_bias,
      wq_t, bq, wk_t, bk, wv_t, bv, wp_t, bp)


def mha_reference(query, key, value, params, attn_mask, num_heads):
    """Pure-JAX f32 reference matching the PyTorch forward (dropout in eval mode)."""
    N, S, E = query.shape
    _, T, _ = key.shape
    D = E // num_heads
    lin = lambda x, w, b: x @ w.T + b
    q = lin(query, params["wq"], params["bq"]).reshape(N, S, num_heads, D).transpose(0, 2, 1, 3)
    k = lin(key, params["wk"], params["bk"]).reshape(N, T, num_heads, D).transpose(0, 2, 1, 3)
    v = lin(value, params["wv"], params["bv"]).reshape(N, T, num_heads, D).transpose(0, 2, 1, 3)
    scores = jnp.einsum("nhsd,nhtd->nhst", q, k) / math.sqrt(D)
    if attn_mask is not None:
        scores = jnp.where(attn_mask == 0, -jnp.inf, scores)
    w = jax.nn.softmax(scores, axis=-1)
    out = jnp.einsum("nhst,nhtd->nhsd", w, v).transpose(0, 2, 1, 3).reshape(N, S, E)
    return lin(out, params["wp"], params["bp"])


def init_params(key, embed_dim):
    """Deterministic parameter init (uniform ±1/sqrt(E), like nn.Linear default)."""
    bound = 1.0 / math.sqrt(embed_dim)
    ks = jax.random.split(key, 8)
    u = lambda k, shape: jax.random.uniform(k, shape, jnp.float32, -bound, bound)
    return {
        "wq": u(ks[0], (embed_dim, embed_dim)), "bq": u(ks[1], (embed_dim,)),
        "wk": u(ks[2], (embed_dim, embed_dim)), "bk": u(ks[3], (embed_dim,)),
        "wv": u(ks[4], (embed_dim, embed_dim)), "bv": u(ks[5], (embed_dim,)),
        "wp": u(ks[6], (embed_dim, embed_dim)), "bp": u(ks[7], (embed_dim,)),
    }


if __name__ == "__main__":
    N, S, T, E, H = 2, 8, 8, 32, 2

    root = jax.random.PRNGKey(0)
    k_param, k_q, k_kv = jax.random.split(root, 3)
    params = init_params(k_param, E)

    query = jax.random.normal(k_q, (N, S, E), dtype=jnp.float32)
    other = jax.random.normal(k_kv, (N, T, E), dtype=jnp.float32)

    # causal-style mask (exercises the masked_fill path)
    attn_mask = jnp.tril(jnp.ones((S, T), dtype=jnp.float32))

    out = multi_head_attention(query, other, other, params,
                               attn_mask=attn_mask, num_heads=H)
    out = jax.block_until_ready(out)

    ref = mha_reference(query, other, other, params, attn_mask, H)
    assert out.shape == (N, S, E)
    # Tolerance accounts for bf16 MXU inputs + approx EUP reciprocal in the kernel
    # vs. the pure-f32 reference.
    assert jnp.allclose(out, ref, atol=3e-2, rtol=3e-2), "mismatch vs reference"

    print("KERNEL_OK")
</pallas_src>

<mosaic_0001>
module attributes {stable_mosaic.version = 11 : i64} {
  func.func @mha_kernel(%arg0: i32, %arg1: memref<2x8x32xbf16, #tpu.memory_space<vmem>>, %arg2: memref<2x8x32xbf16, #tpu.memory_space<vmem>>, %arg3: memref<2x8x32xbf16, #tpu.memory_space<vmem>>, %arg4: memref<8x8xf32, #tpu.memory_space<vmem>>, %arg5: memref<32x32xbf16, #tpu.memory_space<vmem>>, %arg6: memref<1x32xf32, #tpu.memory_space<vmem>>, %arg7: memref<32x32xbf16, #tpu.memory_space<vmem>>, %arg8: memref<1x32xf32, #tpu.memory_space<vmem>>, %arg9: memref<32x32xbf16, #tpu.memory_space<vmem>>, %arg10: memref<1x32xf32, #tpu.memory_space<vmem>>, %arg11: memref<32x32xbf16, #tpu.memory_space<vmem>>, %arg12: memref<1x32xf32, #tpu.memory_space<vmem>>, %arg13: memref<2x8x32xf32, #tpu.memory_space<vmem>>, %arg14: memref<16x32xbf16, #tpu.memory_space<vmem>>) attributes {dimension_semantics = [#tpu.dimension_semantics<parallel>], iteration_bounds = array<i64: 1>, scalar_prefetch = 0 : i64, scratch_operands = 1 : i64, tpu.core_type = #tpu.core_type<tc>, window_params = [{transform_indices = @transform_0, window_bounds = array<i64: 2, 8, 32>}, {transform_indices = @transform_1, window_bounds = array<i64: 2, 8, 32>}, {transform_indices = @transform_2, window_bounds = array<i64: 2, 8, 32>}, {pipeline_mode = #tpu.pipeline_mode<synchronous>, transform_indices = @transform_3, window_bounds = array<i64: 8, 8>}, {pipeline_mode = #tpu.pipeline_mode<synchronous>, transform_indices = @transform_4, window_bounds = array<i64: 32, 32>}, {pipeline_mode = #tpu.pipeline_mode<synchronous>, transform_indices = @transform_5, window_bounds = array<i64: 1, 32>}, {pipeline_mode = #tpu.pipeline_mode<synchronous>, transform_indices = @transform_6, window_bounds = array<i64: 32, 32>}, {pipeline_mode = #tpu.pipeline_mode<synchronous>, transform_indices = @transform_7, window_bounds = array<i64: 1, 32>}, {pipeline_mode = #tpu.pipeline_mode<synchronous>, transform_indices = @transform_8, window_bounds = array<i64: 32, 32>}, {pipeline_mode = #tpu.pipeline_mode<synchronous>, transform_indices = @transform_9, window_bounds = array<i64: 1, 32>}, {pipeline_mode = #tpu.pipeline_mode<synchronous>, transform_indices = @transform_10, window_bounds = array<i64: 32, 32>}, {pipeline_mode = #tpu.pipeline_mode<synchronous>, transform_indices = @transform_11, window_bounds = array<i64: 1, 32>}, {transform_indices = @transform_12, window_bounds = array<i64: 2, 8, 32>}]} {
    %c0 = arith.constant 0 : index
    %c0_0 = arith.constant 0 : index
    %c0_1 = arith.constant 0 : index
    %0 = vector.load %arg1[%c0, %c0_0, %c0_1] : memref<2x8x32xbf16, #tpu.memory_space<vmem>>, vector<2x8x32xbf16>
    %1 = vector.shape_cast %0 : vector<2x8x32xbf16> to vector<16x32xbf16>
    %c0_2 = arith.constant 0 : index
    %c0_3 = arith.constant 0 : index
    %c0_4 = arith.constant 0 : index
    %2 = vector.load %arg2[%c0_2, %c0_3, %c0_4] : memref<2x8x32xbf16, #tpu.memory_space<vmem>>, vector<2x8x32xbf16>
    %3 = vector.shape_cast %2 : vector<2x8x32xbf16> to vector<16x32xbf16>
    %c0_5 = arith.constant 0 : index
    %c0_6 = arith.constant 0 : index
    %c0_7 = arith.constant 0 : index
    %4 = vector.load %arg3[%c0_5, %c0_6, %c0_7] : memref<2x8x32xbf16, #tpu.memory_space<vmem>>, vector<2x8x32xbf16>
    %5 = vector.shape_cast %4 : vector<2x8x32xbf16> to vector<16x32xbf16>
    %c0_8 = arith.constant 0 : index
    %c0_9 = arith.constant 0 : index
    %6 = vector.load %arg5[%c0_8, %c0_9] : memref<32x32xbf16, #tpu.memory_space<vmem>>, vector<32x32xbf16>
    %cst = arith.constant dense<0.000000e+00> : vector<16x32xf32>
    %7 = tpu.matmul %1, %6, %cst {dimension_numbers = #tpu.dot_dimension_numbers<[1], [0], [0], [1], [0, 0, 1, 1], [], []>} : vector<16x32xbf16>, vector<32x32xbf16>, vector<16x32xf32> -> vector<16x32xf32>
    %c0_10 = arith.constant 0 : index
    %c0_11 = arith.constant 0 : index
    %8 = vector.load %arg6[%c0_10, %c0_11] : memref<1x32xf32, #tpu.memory_space<vmem>>, vector<1x32xf32>
    %9 = vector.broadcast %8 : vector<1x32xf32> to vector<16x32xf32>
    %10 = arith.addf %7, %9 : vector<16x32xf32>
    %11 = arith.truncf %10 : vector<16x32xf32> to vector<16x32xbf16>
    %c0_12 = arith.constant 0 : index
    %c0_13 = arith.constant 0 : index
    %12 = vector.load %arg7[%c0_12, %c0_13] : memref<32x32xbf16, #tpu.memory_space<vmem>>, vector<32x32xbf16>
    %cst_14 = arith.constant dense<0.000000e+00> : vector<16x32xf32>
    %13 = tpu.matmul %3, %12, %cst_14 {dimension_numbers = #tpu.dot_dimension_numbers<[1], [0], [0], [1], [0, 0, 1, 1], [], []>} : vector<16x32xbf16>, vector<32x32xbf16>, vector<16x32xf32> -> vector<16x32xf32>
    %c0_15 = arith.constant 0 : index
    %c0_16 = arith.constant 0 : index
    %14 = vector.load %arg8[%c0_15, %c0_16] : memref<1x32xf32, #tpu.memory_space<vmem>>, vector<1x32xf32>
    %15 = vector.broadcast %14 : vector<1x32xf32> to vector<16x32xf32>
    %16 = arith.addf %13, %15 : vector<16x32xf32>
    %17 = arith.truncf %16 : vector<16x32xf32> to vector<16x32xbf16>
    %c0_17 = arith.constant 0 : index
    %c0_18 = arith.constant 0 : index
    %18 = vector.load %arg9[%c0_17, %c0_18] : memref<32x32xbf16, #tpu.memory_space<vmem>>, vector<32x32xbf16>
    %cst_19 = arith.constant dense<0.000000e+00> : vector<16x32xf32>
    %19 = tpu.matmul %5, %18, %cst_19 {dimension_numbers = #tpu.dot_dimension_numbers<[1], [0], [0], [1], [0, 0, 1, 1], [], []>} : vector<16x32xbf16>, vector<32x32xbf16>, vector<16x32xf32> -> vector<16x32xf32>
    %c0_20 = arith.constant 0 : index
    %c0_21 = arith.constant 0 : index
    %20 = vector.load %arg10[%c0_20, %c0_21] : memref<1x32xf32, #tpu.memory_space<vmem>>, vector<1x32xf32>
    %21 = vector.broadcast %20 : vector<1x32xf32> to vector<16x32xf32>
    %22 = arith.addf %19, %21 : vector<16x32xf32>
    %23 = arith.truncf %22 : vector<16x32xf32> to vector<16x32xbf16>
    %c0_22 = arith.constant 0 : index
    %c0_23 = arith.constant 0 : index
    %24 = vector.load %arg4[%c0_22, %c0_23] : memref<8x8xf32, #tpu.memory_space<vmem>>, vector<8x8xf32>
    %25 = vector.extract_strided_slice %11 {offsets = [0, 0], sizes = [16, 16], strides = [1, 1]} : vector<16x32xbf16> to vector<16x16xbf16>
    %26 = vector.shape_cast %25 : vector<16x16xbf16> to vector<2x8x16xbf16>
    %27 = vector.extract_strided_slice %17 {offsets = [0, 0], sizes = [16, 16], strides = [1, 1]} : vector<16x32xbf16> to vector<16x16xbf16>
    %28 = vector.shape_cast %27 : vector<16x16xbf16> to vector<2x8x16xbf16>
    %29 = vector.extract_strided_slice %23 {offsets = [0, 0], sizes = [16, 16], strides = [1, 1]} : vector<16x32xbf16> to vector<16x16xbf16>
    %30 = vector.shape_cast %29 : vector<16x16xbf16> to vector<2x8x16xbf16>
    "tpu.trace_start"() <{level = 10 : i32, message = "bsd,btd->bst"}> : () -> ()
    %cst_24 = arith.constant dense<0.000000e+00> : vector<2x8x8xf32>
    %31 = tpu.matmul %26, %28, %cst_24 {dimension_numbers = #tpu.dot_dimension_numbers<[2], [2], [1], [1], [0, 0, 0, 1, 1, 1], [0], [0]>} : vector<2x8x16xbf16>, vector<2x8x16xbf16>, vector<2x8x8xf32> -> vector<2x8x8xf32>
    "tpu.trace_stop"() : () -> ()
    %32 = vector.shape_cast %24 : vector<8x8xf32> to vector<1x8x8xf32>
    %33 = vector.broadcast %32 : vector<1x8x8xf32> to vector<2x8x8xf32>
    %34 = arith.addf %31, %33 : vector<2x8x8xf32>
    %cst_25 = arith.constant dense<0xFF800000> : vector<2x8xf32>
    %35 = vector.multi_reduction <maximumf>, %34, %cst_25 [2] : vector<2x8x8xf32> to vector<2x8xf32>
    %36 = vector.shape_cast %35 : vector<2x8xf32> to vector<2x8x1xf32>
    %37 = vector.broadcast %36 : vector<2x8x1xf32> to vector<2x8x8xf32>
    %38 = arith.subf %34, %37 : vector<2x8x8xf32>
    %39 = math.exp %38 : vector<2x8x8xf32>
    %cst_26 = arith.constant dense<0.000000e+00> : vector<2x8xf32>
    %40 = vector.multi_reduction <add>, %39, %cst_26 [2] : vector<2x8x8xf32> to vector<2x8xf32>
    %41 = vector.shape_cast %40 : vector<2x8xf32> to vector<2x8x1xf32>
    %42 = tpu.reciprocal %41 {approx = true} : vector<2x8x1xf32> -> vector<2x8x1xf32>
    %43 = vector.broadcast %42 : vector<2x8x1xf32> to vector<2x8x8xf32>
    %44 = arith.mulf %39, %43 : vector<2x8x8xf32>
    %45 = arith.truncf %44 : vector<2x8x8xf32> to vector<2x8x8xbf16>
    "tpu.trace_start"() <{level = 10 : i32, message = "bst,btd->bsd"}> : () -> ()
    %cst_27 = arith.constant dense<0.000000e+00> : vector<2x8x16xf32>
    %46 = tpu.matmul %45, %30, %cst_27 {dimension_numbers = #tpu.dot_dimension_numbers<[2], [1], [1], [2], [0, 0, 0, 1, 1, 2], [0], [0]>} : vector<2x8x8xbf16>, vector<2x8x16xbf16>, vector<2x8x16xf32> -> vector<2x8x16xf32>
    "tpu.trace_stop"() : () -> ()
    %47 = vector.shape_cast %46 : vector<2x8x16xf32> to vector<16x16xf32>
    %48 = arith.truncf %47 : vector<16x16xf32> to vector<16x16xbf16>
    %c0_28 = arith.constant 0 : index
    %c0_29 = arith.constant 0 : index
    %49 = vector.load %arg14[%c0_28, %c0_29] : memref<16x32xbf16, #tpu.memory_space<vmem>>, vector<16x16xbf16>
    tpu.vector_store %arg14[%c0_28, %c0_29], %48 {strides = array<i32>} : memref<16x32xbf16, #tpu.memory_space<vmem>>, vector<16x16xbf16>,
    %50 = vector.extract_strided_slice %11 {offsets = [0, 16], sizes = [16, 16], strides = [1, 1]} : vector<16x32xbf16> to vector<16x16xbf16>
    %51 = vector.shape_cast %50 : vector<16x16xbf16> to vector<2x8x16xbf16>
    %52 = vector.extract_strided_slice %17 {offsets = [0, 16], sizes = [16, 16], strides = [1, 1]} : vector<16x32xbf16> to vector<16x16xbf16>
    %53 = vector.shape_cast %52 : vector<16x16xbf16> to vector<2x8x16xbf16>
    %54 = vector.extract_strided_slice %23 {offsets = [0, 16], sizes = [16, 16], strides = [1, 1]} : vector<16x32xbf16> to vector<16x16xbf16>
    %55 = vector.shape_cast %54 : vector<16x16xbf16> to vector<2x8x16xbf16>
    "tpu.trace_start"() <{level = 10 : i32, message = "bsd,btd->bst"}> : () -> ()
    %cst_30 = arith.constant dense<0.000000e+00> : vector<2x8x8xf32>
    %56 = tpu.matmul %51, %53, %cst_30 {dimension_numbers = #tpu.dot_dimension_numbers<[2], [2], [1], [1], [0, 0, 0, 1, 1, 1], [0], [0]>} : vector<2x8x16xbf16>, vector<2x8x16xbf16>, vector<2x8x8xf32> -> vector<2x8x8xf32>
    "tpu.trace_stop"() : () -> ()
    %57 = vector.shape_cast %24 : vector<8x8xf32> to vector<1x8x8xf32>
    %58 = vector.broadcast %57 : vector<1x8x8xf32> to vector<2x8x8xf32>
    %59 = arith.addf %56, %58 : vector<2x8x8xf32>
    %cst_31 = arith.constant dense<0xFF800000> : vector<2x8xf32>
    %60 = vector.multi_reduction <maximumf>, %59, %cst_31 [2] : vector<2x8x8xf32> to vector<2x8xf32>
    %61 = vector.shape_cast %60 : vector<2x8xf32> to vector<2x8x1xf32>
    %62 = vector.broadcast %61 : vector<2x8x1xf32> to vector<2x8x8xf32>
    %63 = arith.subf %59, %62 : vector<2x8x8xf32>
    %64 = math.exp %63 : vector<2x8x8xf32>
    %cst_32 = arith.constant dense<0.000000e+00> : vector<2x8xf32>
    %65 = vector.multi_reduction <add>, %64, %cst_32 [2] : vector<2x8x8xf32> to vector<2x8xf32>
    %66 = vector.shape_cast %65 : vector<2x8xf32> to vector<2x8x1xf32>
    %67 = tpu.reciprocal %66 {approx = true} : vector<2x8x1xf32> -> vector<2x8x1xf32>
    %68 = vector.broadcast %67 : vector<2x8x1xf32> to vector<2x8x8xf32>
    %69 = arith.mulf %64, %68 : vector<2x8x8xf32>
    %70 = arith.truncf %69 : vector<2x8x8xf32> to vector<2x8x8xbf16>
    "tpu.trace_start"() <{level = 10 : i32, message = "bst,btd->bsd"}> : () -> ()
    %cst_33 = arith.constant dense<0.000000e+00> : vector<2x8x16xf32>
    %71 = tpu.matmul %70, %55, %cst_33 {dimension_numbers = #tpu.dot_dimension_numbers<[2], [1], [1], [2], [0, 0, 0, 1, 1, 2], [0], [0]>} : vector<2x8x8xbf16>, vector<2x8x16xbf16>, vector<2x8x16xf32> -> vector<2x8x16xf32>
    "tpu.trace_stop"() : () -> ()
    %72 = vector.shape_cast %71 : vector<2x8x16xf32> to vector<16x16xf32>
    %73 = arith.truncf %72 : vector<16x16xf32> to vector<16x16xbf16>
    %c0_34 = arith.constant 0 : index
    %c16 = arith.constant 16 : index
    %74 = vector.load %arg14[%c0_34, %c16] : memref<16x32xbf16, #tpu.memory_space<vmem>>, vector<16x16xbf16>
    tpu.vector_store %arg14[%c0_34, %c16], %73 {strides = array<i32>} : memref<16x32xbf16, #tpu.memory_space<vmem>>, vector<16x16xbf16>,
    %c0_35 = arith.constant 0 : index
    %c0_36 = arith.constant 0 : index
    %75 = vector.load %arg14[%c0_35, %c0_36] : memref<16x32xbf16, #tpu.memory_space<vmem>>, vector<16x32xbf16>
    %c0_37 = arith.constant 0 : index
    %c0_38 = arith.constant 0 : index
    %76 = vector.load %arg11[%c0_37, %c0_38] : memref<32x32xbf16, #tpu.memory_space<vmem>>, vector<32x32xbf16>
    %cst_39 = arith.constant dense<0.000000e+00> : vector<16x32xf32>
    %77 = tpu.matmul %75, %76, %cst_39 {dimension_numbers = #tpu.dot_dimension_numbers<[1], [0], [0], [1], [0, 0, 1, 1], [], []>} : vector<16x32xbf16>, vector<32x32xbf16>, vector<16x32xf32> -> vector<16x32xf32>
    %c0_40 = arith.constant 0 : index
    %c0_41 = arith.constant 0 : index
    %78 = vector.load %arg12[%c0_40, %c0_41] : memref<1x32xf32, #tpu.memory_space<vmem>>, vector<1x32xf32>
    %79 = vector.broadcast %78 : vector<1x32xf32> to vector<16x32xf32>
    %80 = arith.addf %77, %79 : vector<16x32xf32>
    %81 = vector.shape_cast %80 : vector<16x32xf32> to vector<2x8x32xf32>
    %c0_42 = arith.constant 0 : index
    %c0_43 = arith.constant 0 : index
    %c0_44 = arith.constant 0 : index
    %82 = vector.load %arg13[%c0_42, %c0_43, %c0_44] : memref<2x8x32xf32, #tpu.memory_space<vmem>>, vector<2x8x32xf32>
    tpu.vector_store %arg13[%c0_42, %c0_43, %c0_44], %81 {strides = array<i32>} : memref<2x8x32xf32, #tpu.memory_space<vmem>>, vector<2x8x32xf32>,
    return
  }
  func.func @transform_0(%arg0: i32) -> (i32, i32, i32) {
    %c0_i32 = arith.constant 0 : i32
    %c0_i32_0 = arith.constant 0 : i32
    %c0_i32_1 = arith.constant 0 : i32
    return %arg0, %c0_i32, %c0_i32_0 : i32, i32, i32
  }
  func.func @transform_1(%arg0: i32) -> (i32, i32, i32) {
    %c0_i32 = arith.constant 0 : i32
    %c0_i32_0 = arith.constant 0 : i32
    %c0_i32_1 = arith.constant 0 : i32
    return %arg0, %c0_i32, %c0_i32_0 : i32, i32, i32
  }
  func.func @transform_2(%arg0: i32) -> (i32, i32, i32) {
    %c0_i32 = arith.constant 0 : i32
    %c0_i32_0 = arith.constant 0 : i32
    %c0_i32_1 = arith.constant 0 : i32
    return %arg0, %c0_i32, %c0_i32_0 : i32, i32, i32
  }
  func.func @transform_3(%arg0: i32) -> (i32, i32) {
    %c0_i32 = arith.constant 0 : i32
    %c0_i32_0 = arith.constant 0 : i32
    %c0_i32_1 = arith.constant 0 : i32
    return %c0_i32, %c0_i32_0 : i32, i32
  }
  func.func @transform_4(%arg0: i32) -> (i32, i32) {
    %c0_i32 = arith.constant 0 : i32
    %c0_i32_0 = arith.constant 0 : i32
    %c0_i32_1 = arith.constant 0 : i32
    return %c0_i32, %c0_i32_0 : i32, i32
  }
  func.func @transform_5(%arg0: i32) -> (i32, i32) {
    %c0_i32 = arith.constant 0 : i32
    %c0_i32_0 = arith.constant 0 : i32
    %c0_i32_1 = arith.constant 0 : i32
    return %c0_i32, %c0_i32_0 : i32, i32
  }
  func.func @transform_6(%arg0: i32) -> (i32, i32) {
    %c0_i32 = arith.constant 0 : i32
    %c0_i32_0 = arith.constant 0 : i32
    %c0_i32_1 = arith.constant 0 : i32
    return %c0_i32, %c0_i32_0 : i32, i32
  }
  func.func @transform_7(%arg0: i32) -> (i32, i32) {
    %c0_i32 = arith.constant 0 : i32
    %c0_i32_0 = arith.constant 0 : i32
    %c0_i32_1 = arith.constant 0 : i32
    return %c0_i32, %c0_i32_0 : i32, i32
  }
  func.func @transform_8(%arg0: i32) -> (i32, i32) {
    %c0_i32 = arith.constant 0 : i32
    %c0_i32_0 = arith.constant 0 : i32
    %c0_i32_1 = arith.constant 0 : i32
    return %c0_i32, %c0_i32_0 : i32, i32
  }
  func.func @transform_9(%arg0: i32) -> (i32, i32) {
    %c0_i32 = arith.constant 0 : i32
    %c0_i32_0 = arith.constant 0 : i32
    %c0_i32_1 = arith.constant 0 : i32
    return %c0_i32, %c0_i32_0 : i32, i32
  }
  func.func @transform_10(%arg0: i32) -> (i32, i32) {
    %c0_i32 = arith.constant 0 : i32
    %c0_i32_0 = arith.constant 0 : i32
    %c0_i32_1 = arith.constant 0 : i32
    return %c0_i32, %c0_i32_0 : i32, i32
  }
  func.func @transform_11(%arg0: i32) -> (i32, i32) {
    %c0_i32 = arith.constant 0 : i32
    %c0_i32_0 = arith.constant 0 : i32
    %c0_i32_1 = arith.constant 0 : i32
    return %c0_i32, %c0_i32_0 : i32, i32
  }
  func.func @transform_12(%arg0: i32) -> (i32, i32, i32) {
    %c0_i32 = arith.constant 0 : i32
    %c0_i32_0 = arith.constant 0 : i32
    %c0_i32_1 = arith.constant 0 : i32
    return %arg0, %c0_i32, %c0_i32_0 : i32, i32, i32
  }
}

</mosaic_0001>

<bundles_post_ra>
// kernel: tpu_custom_call.1
= control target key start
LH: loop header
LB: loop body
LE: loop exit
PB: predicated region body
PF: predicated region fallthrough
CT: control target
= control target key end

     0   :  { %17 = vsyncpa [#allocation4], 0  ;;  %s1600_s0 = inlined_call_operand.hbm [shape: bf16[2,8,32], index: 0, kind: input, shape index: {}]   ;;  %s1601_s1 = inlined_call_operand.hbm [shape: bf16[2,8,32], index: 1, kind: input, shape index: {}]   ;;  %s1602_s2 = inlined_call_operand.hbm [shape: bf16[2,8,32], index: 2, kind: input, shape index: {}]   ;;  %s1603_s3 = inlined_call_operand.hbm [shape: f32[8,8], index: 3, kind: input, shape index: {}]   ;;  %s1604_s4 = inlined_call_operand.hbm [shape: bf16[32,32], index: 4, kind: input, shape index: {}]   ;;  %s1605_s5 = inlined_call_operand.vmem [shape: f32[1,32], index: 5, kind: input, shape index: {}]   ;;  %s1606_s6 = inlined_call_operand.vmem [shape: bf16[32,32], index: 6, kind: input, shape index: {}]   ;;  %s1607_s7 = inlined_call_operand.vmem [shape: f32[1,32], index: 7, kind: input, shape index: {}]   ;;  %s1608_s8 = inlined_call_operand.hbm [shape: bf16[32,32], index: 8, kind: input, shape index: {}]   ;;  %s1609_s9 = inlined_call_operand.hbm [shape: f32[1,32], index: 9, kind: input, shape index: {}]   ;;  %s1610_s10 = inlined_call_operand.vmem [shape: bf16[32,32], index: 10, kind: input, shape index: {}]   ;;  %s1611_s11 = inlined_call_operand.vmem [shape: f32[1,32], index: 11, kind: input, shape index: {}]   ;;  %s1612_s12 = inlined_call_operand.hbm [shape: f32[2,8,32], index: 12, kind: output, shape index: {}]  }
   0x1   :  { %18 = vsyncpa [#allocation7], 0 }
   0x2   :  { %19 = vsyncpa [#allocation10], 0 }
   0x3   :  { %20 = vsyncpa [#allocation13], 0 }
   0x4   :  { %21 = vsyncpa [#allocation5], 0  ;;  %s1282_s21 = smov [#allocation6]   ;;  %s1283_s23 = smov [#allocation9]  }
   0x5   :  { %s39_s22 = sshll.u32 %s1282_s21, 4  ;;  %s64_s24 = sshll.u32 %s1283_s23, 4  ;;  %s40_s22 = int_to_ptr.vmem [resolvable:$true] %s39_s22  ;;  %s65_s24 = int_to_ptr.vmem [resolvable:$true] %s64_s24 }
   0x6   :  { %s1096_s27 = scalar_lea.hbm %s1601_s1, 128 }
   0x7   :  { %p1097_p0 = scmp.ne.s32.totalorder %s1601_s1, %s1096_s27  ;;  %p1100_p1 = scmp.lt.u32.totalorder %s1096_s27, %s1601_s1 }
   0x9   :  { %p1102_p2 = pnand %p1100_p1, %p1097_p0 }
   0xb   :  { %1105 = shalt.err (!%p1102_p2)
}
   0xc   :  { %s1106_s14 = scalar_lea.vmem %s40_s22, 128  ;;  %p1111_p4 = scmp.lt.s32.totalorder %s40_s22, %s40_s22 }
   0xd   :  { %p1107_p3 = scmp.ne.s32.totalorder %s40_s22, %s1106_s14  ;;  %p1112_p5 = scmp.lt.s32.totalorder %s1106_s14, %s1106_s14 }
   0xf   :  { %p1113_p6 = por %p1112_p5, %p1111_p4 }
  0x11   :  { %p1114_p7 = pnand %p1113_p6, %p1107_p3 }
  0x13   :  { %1117 = shalt.err (!%p1114_p7)
}
  0x14   :  { %s1284_s15 = smov 64   ;;  %s1285_s16 = smov 4  }
  0x15   :  { %45 = dma.hbm_to_vmem [thread:$0]  %s1601_s1, 128, %s40_s22, [#allocation7], %s1284_s15, %s1284_s15, %s1285_s16  }
  0x16   :  { %s1118_s21 = scalar_lea.hbm %s1603_s3, 128 }
  0x17   :  { %p1119_p8 = scmp.ne.s32.totalorder %s1603_s3, %s1118_s21  ;;  %p1122_p9 = scmp.lt.u32.totalorder %s1118_s21, %s1603_s3 }
  0x19   :  { %p1124_p10 = pnand %p1122_p9, %p1119_p8 }
  0x1b   :  { %1127 = shalt.err (!%p1124_p10)
}
  0x1c   :  { %s1128_s28 = scalar_lea.vmem %s65_s24, 128  ;;  %p1133_p12 = scmp.lt.s32.totalorder %s65_s24, %s65_s24 }
  0x1d   :  { %p1129_p11 = scmp.ne.s32.totalorder %s65_s24, %s1128_s28  ;;  %p1134_p13 = scmp.lt.s32.totalorder %s1128_s28, %s1128_s28 }
  0x1f   :  { %p1135_p0 = por %p1134_p13, %p1133_p12 }
  0x21   :  { %p1136_p1 = pnand %p1135_p0, %p1129_p11 }
  0x23   :  { %1139 = shalt.err (!%p1136_p1)
}
  0x24   :  { %67 = dma.hbm_to_vmem [thread:$0]  %s1603_s3, 128, %s65_s24, [#allocation10]  }
  0x25   :  { %s1286_s29 = smov [#allocation12]   ;;  %s1287_s13 = smov [#allocation3]  }
  0x26   :  { %s91_s30 = sshll.u32 %s1286_s29, 4  ;;  %s27_s14 = sshll.u32 %s1287_s13, 4  ;;  %s92_s30 = int_to_ptr.vmem [resolvable:$true] %s91_s30  ;;  %s1390_s14 = int_to_ptr.vmem [resolvable:$true] %s27_s14 }
  0x27   :  { %s1140_s19 = scalar_lea.hbm %s1608_s8, 256 }
  0x28   :  { %p1141_p2 = scmp.ne.s32.totalorder %s1608_s8, %s1140_s19  ;;  %p1144_p3 = scmp.lt.u32.totalorder %s1140_s19, %s1608_s8 }
  0x2a   :  { %p1146_p4 = pnand %p1144_p3, %p1141_p2 }
  0x2c   :  { %1149 = shalt.err (!%p1146_p4)
}
  0x2d   :  { %s1150_s3 = scalar_lea.vmem %s92_s30, 256  ;;  %p1155_p6 = scmp.lt.s32.totalorder %s92_s30, %s92_s30 }
  0x2e   :  { %p1151_p5 = scmp.ne.s32.totalorder %s92_s30, %s1150_s3  ;;  %p1156_p7 = scmp.lt.s32.totalorder %s1150_s3, %s1150_s3 }
  0x30   :  { %p1157_p8 = por %p1156_p7, %p1155_p6 }
  0x32   :  { %p1158_p9 = pnand %p1157_p8, %p1151_p5 }
  0x34   :  { %1161 = shalt.err (!%p1158_p9)
}
  0x35   :  { %97 = dma.hbm_to_vmem [thread:$0]  %s1608_s8, 256, %s92_s30, [#allocation13], %s1284_s15, %s1284_s15, %s1285_s16  }
  0x36   :  { %s1162_s1 = scalar_lea.hbm %s1600_s0, 128 }
  0x37   :  { %p1163_p10 = scmp.ne.s32.totalorder %s1600_s0, %s1162_s1  ;;  %p1166_p11 = scmp.lt.u32.totalorder %s1162_s1, %s1600_s0 }
  0x39   :  { %p1168_p12 = pnand %p1166_p11, %p1163_p10 }
  0x3b   :  { %1171 = shalt.err (!%p1168_p12)
}
  0x3c   :  { %s1172_s18 = scalar_lea.vmem %s1390_s14, 128  ;;  %p1177_p0 = scmp.lt.s32.totalorder %s1390_s14, %s1390_s14 }
  0x3d   :  { %p1173_p13 = scmp.ne.s32.totalorder %s1390_s14, %s1172_s18  ;;  %p1178_p1 = scmp.lt.s32.totalorder %s1172_s18, %s1172_s18 }
  0x3f   :  { %p1179_p2 = por %p1178_p1, %p1177_p0 }
  0x41   :  { %p1180_p3 = pnand %p1179_p2, %p1173_p13 }
  0x43   :  { %1183 = shalt.err (!%p1180_p3)
}
  0x44   :  { %33 = dma.hbm_to_vmem [thread:$0]  %s1600_s0, 128, %s1390_s14, [#allocation4], %s1284_s15, %s1284_s15, %s1285_s16  }
  0x45   :  { %s1288_s19 = smov [#allocation8]   ;;  %s1289_s21 = smov [#allocation11]  }
  0x46   :  { %s51_s20 = sshll.u32 %s1288_s19, 4  ;;  %s73_s23 = sshll.u32 %s1289_s21, 4  ;;  %s52_s20 = int_to_ptr.vmem [resolvable:$true] %s51_s20  ;;  %s1427_s23 = int_to_ptr.vmem [resolvable:$true] %s73_s23 }
  0x47   :  { %s1184_s24 = scalar_lea.hbm %s1602_s2, 128 }
  0x48   :  { %p1185_p4 = scmp.ne.s32.totalorder %s1602_s2, %s1184_s24  ;;  %p1188_p5 = scmp.lt.u32.totalorder %s1184_s24, %s1602_s2 }
  0x4a   :  { %p1190_p6 = pnand %p1188_p5, %p1185_p4 }
  0x4c   :  { %1193 = shalt.err (!%p1190_p6)
}
  0x4d   :  { %s1194_s0 = scalar_lea.vmem %s52_s20, 128  ;;  %p1199_p8 = scmp.lt.s32.totalorder %s52_s20, %s52_s20 }
  0x4e   :  { %p1195_p7 = scmp.ne.s32.totalorder %s52_s20, %s1194_s0  ;;  %p1200_p9 = scmp.lt.s32.totalorder %s1194_s0, %s1194_s0 }
  0x50   :  { %p1201_p10 = por %p1200_p9, %p1199_p8 }
  0x52   :  { %p1202_p11 = pnand %p1201_p10, %p1195_p7 }
  0x54   :  { %1205 = shalt.err (!%p1202_p11)
}
  0x55   :  { %57 = dma.hbm_to_vmem [thread:$0]  %s1602_s2, 128, %s52_s20, [#allocation7], %s1284_s15, %s1284_s15, %s1285_s16  }
  0x56   :  { %s1206_s17 = scalar_lea.hbm %s1604_s4, 256 }
  0x57   :  { %p1207_p12 = scmp.ne.s32.totalorder %s1604_s4, %s1206_s17  ;;  %p1210_p13 = scmp.lt.u32.totalorder %s1206_s17, %s1604_s4 }
  0x59   :  { %p1212_p0 = pnand %p1210_p13, %p1207_p12 }
  0x5b   :  { %1215 = shalt.err (!%p1212_p0)
}
  0x5c   :  { %s1216_s21 = scalar_lea.vmem %s1427_s23, 256  ;;  %p1221_p2 = scmp.lt.s32.totalorder %s1427_s23, %s1427_s23 }
  0x5d   :  { %p1217_p1 = scmp.ne.s32.totalorder %s1427_s23, %s1216_s21  ;;  %p1222_p3 = scmp.lt.s32.totalorder %s1216_s21, %s1216_s21 }
  0x5f   :  { %p1223_p4 = por %p1222_p3, %p1221_p2 }
  0x61   :  { %p1224_p5 = pnand %p1223_p4, %p1217_p1 }
  0x63   :  { %1227 = shalt.err (!%p1224_p5)
}
  0x64   :  { %79 = dma.hbm_to_vmem [thread:$0]  %s1604_s4, 256, %s1427_s23, [#allocation10], %s1284_s15, %s1284_s15, %s1285_s16  }
  0x65   :  { %s1290_s25 = smov [#allocation14]   ;;  %s1228_s27 = scalar_lea.hbm %s1609_s9, 16 }
  0x66   :  { %s104_s3 = sshll.u32 %s1290_s25, 4  ;;  %p1229_p6 = scmp.ne.s32.totalorder %s1609_s9, %s1228_s27  ;;  %s105_s3 = int_to_ptr.vmem [resolvable:$true] %s104_s3 }
  0x67   :  { %p1232_p7 = scmp.lt.u32.totalorder %s1228_s27, %s1609_s9 }
  0x69   :  { %p1234_p8 = pnand %p1232_p7, %p1229_p6 }
  0x6b   :  { %1237 = shalt.err (!%p1234_p8)
}
  0x6c   :  { %s1238_s22 = scalar_lea.vmem %s105_s3, 16  ;;  %s1242_s4 = scalar_lea.vmem %s105_s3, 32 }
  0x6d   :  { %p1239_p9 = scmp.ne.s32.totalorder %s105_s3, %s1238_s22  ;;  %p1243_p10 = scmp.lt.s32.totalorder %s105_s3, %s105_s3 }
  0x6e   :  { %p1244_p11 = scmp.lt.s32.totalorder %s1242_s4, %s1238_s22 }
  0x70   :  { %p1245_p12 = por %p1244_p11, %p1243_p10 }
  0x72   :  { %p1246_p13 = pnand %p1245_p12, %p1239_p9 }
  0x74   :  { %1249 = shalt.err (!%p1246_p13)
}
  0x75   :  { %107 = dma.hbm_to_vmem [thread:$0]  %s1609_s9, 16, %s105_s3, [#allocation13]  }
  0x76   :  { %1272 = dma.done.wait [#allocation4], 128  }
  0x77   :  { %1273 = vsyncadd [#allocation4], 4294967168 }
  0x78   :  { %1274 = dma.done.wait [#allocation7], 256  }
  0x79   :  { %1275 = vsyncadd [#allocation7], 4294967040 }
  0x7a   :  { %1276 = dma.done.wait [#allocation10], 384  }
  0x7b   :  { %1277 = vsyncadd [#allocation10], 4294966912 }
  0x7c   :  { %1278 = dma.done.wait [#allocation13], 272  }
  0x7d   :  { %1279 = vsyncadd [#allocation13], 4294967024  ;;  %v1291_v0 = vmov 0.0   ;;  %vm1292_vm0 = vmmov 0   ;;  %v1069_v1 = vld [vmem:[%s1606_s6] sm:$0xff]   ;;  %v1070_v2 = vld [vmem:[%s1606_s6 + $0x8] sm:$0xff]  }
  0x7e   :  { %981 = vmatprep.subr.bf16.mxu1 %v1291_v0  ;;  %973 = vmatprep.subr.bf16.mxu0 %v1291_v0  ;;  %v1071_v3 = vld [vmem:[#allocation11] sm:$0xff]   ;;  %v1073_v4 = vld [vmem:[#allocation11 + $0x8] sm:$0xff]   ;;  %vm168_vm1 = vcmask 261120   ;;  %v1075_v7 = vld [vmem:[#allocation12] sm:$0xff]   ;;  %vm376_vm2 = vcmask 130048   ;;  %vm497_vm3 = vcmask 1043456  }
  0x7f   :  { %985 = vmatprep.mubr.msk.bf16.mxu1 %vm1292_vm0, %v1291_v0  ;;  %977 = vmatprep.mubr.msk.bf16.mxu0 %vm1292_vm0, %v1291_v0  ;;  %v1072_v5 = vld [vmem:[#allocation6] sm:$0xff]   ;;  %v1074_v6 = vld [vmem:[#allocation3] sm:$0xff]   ;;  %v1076_v8 = vld [vmem:[#allocation12 + $0x8] sm:$0xff]   ;;  %vm469_vm4 = vcmask 64512   ;;  %s1294_s2 = smov 16   ;;  %vm814_vm5 = vcmask 261248  }
  0x80   :  { %982 = vmatpush3.bf16.msra.mxu1 %v1069_v1  ;;  %974 = vmatpush3.bf16.msra.mxu0 %v1071_v3  ;;  %v1077_v9 = vld [vmem:[#allocation8] sm:$0xff]   ;;  %v911_v10 = vld [vmem:[%s1607_s7] ss:$0 sm:$0xff]  ;;  %s1293_s7 = smov 112   ;;  %v916_v30 = vld [vmem:[#allocation14] ss:$0 sm:$0xff] }
  0x81   :  { %983 = vmatprep.subr.bf16.mxu1 %v1291_v0  ;;  %975 = vmatprep.subr.bf16.mxu0 %v1291_v0  ;;  %v906_v15 = vld [vmem:[%s1605_s5] ss:$0 sm:$0xff]  ;;  %s1295_s25 = smov [#allocation15]  }
  0x82   :  { %v1530_v41 = vld [vmem:[#allocation9] sm:$0xff]  ;;  %s891_s3 = sshll.u32 %s1295_s25, 4  ;;  %s892_s3 = int_to_ptr.vmem [resolvable:$true] %s891_s3 }
  0x83   :  { %s1250_s24 = scalar_lea.vmem %s892_s3, 256  ;;  %p1255_p1 = scmp.lt.s32.totalorder %s892_s3, %s892_s3 }
  0x84   :  { %984 = vmatpush3.bf16.msra.mxu1 %v1070_v2  ;;  %976 = vmatpush3.bf16.msra.mxu0 %v1073_v4  ;;  %p1251_p0 = scmp.ne.s32.totalorder %s892_s3, %s1250_s24  ;;  %p1256_p2 = scmp.lt.s32.totalorder %s1250_s24, %s1250_s24 }
  0x85   :  { %997 = vmatprep.subr.bf16.mxu1 %v1291_v0  ;;  %989 = vmatprep.subr.bf16.mxu0 %v1291_v0 }
  0x86   :  { %p1257_p3 = por %p1256_p2, %p1255_p1 }
  0x87   :  { %986 = vmatmul.mubr.msk.bf16.vlgmr.msra.gmra.mrb[0].mxu1 %vm168_vm1, %v1072_v5  ;;  %978 = vmatmul.mubr.msk.bf16.vlgmr.msra.gmra.mrb[0].mxu0 %vm168_vm1, %v1074_v6 }
  0x88   :  { %999 = vmatprep.mubr.msk.bf16.mxu1 %vm1292_vm0, %v1291_v0  ;;  %990 = vmatpush3.bf16.msra.mxu0 %v1075_v7  ;;  %p1258_p4 = pnand %p1257_p3, %p1251_p0 }
  0x89   :  { %993 = vmatprep.mubr.msk.bf16.mxu0 %vm1292_vm0, %v1291_v0  ;;  %991 = vmatprep.subr.bf16.mxu0 %v1291_v0 }
  0x8c   :  { %992 = vmatpush3.bf16.msra.mxu0 %v1076_v8 }
  0x8d   :  { %1003 = vmatprep.subr.bf16.mxu0 %v1291_v0 }
  0x8f   :  { %994 = vmatmul.mubr.msk.bf16.vlgmr.msra.gmra.mrb[4].mxu0 %vm168_vm1, %v1077_v9 }
  0x90   :  { %1005 = vmatprep.mubr.msk.bf16.mxu0 %vm1292_vm0, %v1291_v0 }
 0x15a   :  { %v279_v11 = vpop.f32.mrb[0].mxu1  ;;  %v206_v16 = vpop.f32.mrb[0].mxu0 }
 0x15b   :  { %v280_v12 = vadd.f32 %v911_v10, %v279_v11  ;;  %v987_v13 = vpop.f32.mrb[1].mxu1  ;;  %v979_v20 = vpop.f32.mrb[1].mxu0  ;;  %v207_v24 = vadd.f32 %v906_v15, %v206_v16 }
 0x15c   :  { %v282_v14 = vpop.f32.mrb[2].mxu1  ;;  %v209_v21 = vpop.f32.mrb[2].mxu0 }
 0x15d   :  { %v941_v17 = vpack.c.bf16 %v280_v12, %v280_v12  ;;  %v283_v18 = vadd.f32 %v911_v10, %v282_v14  ;;  %v988_v19 = vpop.f32.mrb[3].mxu1  ;;  %v980_v25 = vpop.f32.mrb[3].mxu0  ;;  %v939_v27 = vpack.c.bf16 %v207_v24, %v207_v24  ;;  %v210_v28 = vadd.f32 %v906_v15, %v209_v21 }
 0x15f   :  { %v381_v22 = vsel %vm376_vm2, %v941_v17, 0  ;;  %v942_v23 = vpack.c.bf16 %v283_v18, %v283_v18  ;;  %v940_v29 = vpack.c.bf16 %v210_v28, %v210_v28 }
 0x160   :  { %998 = vmatpush3.bf16.xpose.msra.mxu1 %v381_v22 }
 0x161   :  { %v427_v26 = vsel %vm376_vm2, %v942_v23, 0  ;;  %641 = vrot.lane.b32.xlu1 %v942_v23, %s1293_s7  ;;  %1009 = vmatprep.subr.bf16.mxu1 %v1291_v0 }
 0x162   :  { %1004 = vmatpush3.bf16.xpose.msra.mxu0 %v427_v26  ;;  %v352_v31 = vpop.f32.mrb[4].mxu0 }
 0x163   :  { %1015 = vmatprep.subr.bf16.mxu0 %v1291_v0  ;;  %v353_v32 = vadd.f32 %v916_v30, %v352_v31  ;;  %v995_v33 = vpop.f32.mrb[5].mxu0 }
 0x164   :  { %v355_v34 = vpop.f32.mrb[6].mxu0 }
 0x165   :  { %v1520_v35 = vpack.c.bf16 %v353_v32, %v353_v32  ;;  %v356_v36 = vadd.f32 %v916_v30, %v355_v34  ;;  %v996_v37 = vpop.f32.mrb[7].mxu0 }
 0x167   :  { %1000 = vmatmul.mubr.msk.bf16.vlgmr.msra.gmra.mrb[4].mxu1 %vm376_vm2, %v939_v27  ;;  %v499_v38 = vsel %vm497_vm3, %v1520_v35, 0  ;;  %v1524_v39 = vpack.c.bf16 %v356_v36, %v356_v36 }
 0x168   :  { %1011 = vmatprep.mubr.msk.bf16.mxu1 %vm1292_vm0, %v1291_v0  ;;  %1010 = vmatpush3.bf16.msra.mxu1 %v499_v38 }
 0x169   :  { %1006 = vmatmul.mubr.msk.bf16.vlgmr.msra.gmra.mrb[8].mxu0 %vm376_vm2, %v940_v29  ;;  %v545_v40 = vsel %vm497_vm3, %v1524_v39, 0  ;;  %1021 = vmatprep.subr.bf16.mxu1 %v1291_v0 }
 0x16a   :  { %1017 = vmatprep.mubr.msk.bf16.mxu0 %vm1292_vm0, %v1291_v0  ;;  %1016 = vmatpush3.bf16.msra.mxu0 %v545_v40 }
 0x16b   :  { %1027 = vmatprep.subr.bf16.mxu0 %v1291_v0 }
 0x1d3   :  { %v642_v1 = vpop.permute.xlu1 %641 }
 0x1d4   :  { %v647_v12 = vsel %vm376_vm2, %v642_v1, 0 }
 0x23a   :  { %v417_v42 = vpop.f32.mrb[4].mxu1 }
 0x23b   :  { %v418_v43 = vadd.f32 %v417_v42, %v1530_v41  ;;  %v1001_v44 = vpop.f32.mrb[5].mxu1 }
 0x23c   :  { %v420_v45 = vpop.f32.mrb[6].mxu1  ;;  %v463_v46 = vpop.f32.mrb[8].mxu0 }
 0x23d   :  { %v464_v47 = vadd.f32 %v463_v46, %v1530_v41  ;;  %v1002_v48 = vpop.f32.mrb[7].mxu1  ;;  %v1007_v49 = vpop.f32.mrb[9].mxu0  ;;  %v470_v50 = vsel %vm469_vm4, %v418_v43, -inf }
 0x23e   :  { %471 = vmax.xlane.f32.xlu0 %v470_v50  ;;  %v466_v51 = vpop.f32.mrb[10].mxu0 }
 0x23f   :  { %v1008_v52 = vpop.f32.mrb[11].mxu0  ;;  %v473_v53 = vsel %vm469_vm4, %v464_v47, -inf }
 0x242   :  { %474 = vmax.xlane.f32.xlu0 %v473_v53 }
 0x258   :  { %591 = vrot.lane.b32.xlu0 %v941_v17, %s1293_s7 }
 0x2cb   :  { %v472_v54 = vpop.xlane.xlu0 %471 }
 0x2cc   :  { %v476_v55 = vsub.f32 %v418_v43, %v472_v54 }
 0x2ce   :  { %v478_v56 = vmul.f32 1.442695, %v476_v55 }
 0x2cf   :  { %v475_v57 = vpop.xlane.xlu0 %474 }
 0x2d0   :  { %1080 = vpow2.f32 %v478_v56  ;;  %v477_v58 = vsub.f32 %v464_v47, %v475_v57 }
 0x2d2   :  { %v480_v59 = vmul.f32 1.442695, %v477_v58  ;;  %v1078_v58 = vld [vmem:[%s1610_s10] sm:$0xff]  }
 0x2d3   :  { %v592_v6 = vpop.permute.xlu0 %591 }
 0x2d4   :  { %1082 = vpow2.f32 %v480_v59  ;;  %v597_v9 = vsel %vm376_vm2, %v592_v6, 0  ;;  %v1079_v59 = vld [vmem:[%s1610_s10 + $0x8] sm:$0xff]  }
 0x2da   :  { %v1081_v60 = vpop.eup %1080 }
 0x2db   :  { %v482_v61 = vsel %vm469_vm4, %v1081_v60, 0.0 }
 0x2dc   :  { %483 = vadd.xlane.f32.xlu1 %v482_v61 }
 0x2de   :  { %v1083_v62 = vpop.eup %1082 }
 0x2df   :  { %v485_v63 = vsel %vm469_vm4, %v1083_v62, 0.0 }
 0x2e0   :  { %486 = vadd.xlane.f32.xlu1 %v485_v63 }
 0x2f1   :  { %589 = vrot.lane.b32.xlu1 %v939_v27, %s1293_s7 }
 0x2f5   :  { %639 = vrot.lane.b32.xlu1 %v940_v29, %s1293_s7 }
 0x369   :  { %v484_v2 = vpop.xlane.xlu1 %483 }
 0x36a   :  { %1084 = vrcp.f32 %v484_v2 }
 0x36d   :  { %v487_v3 = vpop.xlane.xlu1 %486 }
 0x36e   :  { %1086 = vrcp.f32 %v487_v3 }
 0x371   :  { %v590_v13 = vpop.permute.xlu1 %589 }
 0x374   :  { %v1085_v4 = vpop.eup %1084 }
 0x375   :  { %v490_v5 = vmul.f32 %v1085_v4, %v1081_v60  ;;  %v640_v14 = vpop.permute.xlu1 %639 }
 0x377   :  { %v492_v7 = vpack.c.bf16 %v490_v5, %v490_v5 }
 0x378   :  { %v1087_v8 = vpop.eup %1086 }
 0x379   :  { %v491_v10 = vmul.f32 %v1087_v8, %v1083_v62  ;;  %1012 = vmatmul.mubr.msk.bf16.vlgmr.msra.gmra.mrb[8].mxu1 %vm469_vm4, %v492_v7 }
 0x37a   :  { %1022 = vmatpush3.bf16.xpose.msra.mxu1 %v597_v9  ;;  %1023 = vmatprep.mubr.msk.bf16.mxu1 %vm1292_vm0, %v1291_v0 }
 0x37b   :  { %v493_v11 = vpack.c.bf16 %v491_v10, %v491_v10  ;;  %1033 = vmatprep.subr.bf16.mxu1 %v1291_v0 }
 0x37d   :  { %1018 = vmatmul.mubr.msk.bf16.vlgmr.msra.gmra.mrb[12].mxu0 %vm469_vm4, %v493_v11 }
 0x37e   :  { %1028 = vmatpush3.bf16.xpose.msra.mxu0 %v647_v12  ;;  %1029 = vmatprep.mubr.msk.bf16.mxu0 %vm1292_vm0, %v1291_v0 }
 0x37f   :  { %1039 = vmatprep.subr.bf16.mxu0 %v1291_v0 }
 0x381   :  { %1024 = vmatmul.mubr.msk.bf16.vlgmr.msra.gmra.mrb[12].mxu1 %vm376_vm2, %v590_v13 }
 0x382   :  { %1035 = vmatprep.mubr.msk.bf16.mxu1 %vm1292_vm0, %v1291_v0 }
 0x385   :  { %1030 = vmatmul.mubr.msk.bf16.vlgmr.msra.gmra.mrb[16].mxu0 %vm376_vm2, %v640_v14 }
 0x386   :  { %1041 = vmatprep.mubr.msk.bf16.mxu0 %vm1292_vm0, %v1291_v0 }
 0x44c   :  { %v535_v15 = vpop.f32.mrb[8].mxu1 }
 0x44d   :  { %v1013_v16 = vpop.f32.mrb[9].mxu1 }
 0x44e   :  { %v538_v17 = vpop.f32.mrb[10].mxu1 }
 0x44f   :  { %v1014_v18 = vpop.f32.mrb[11].mxu1 }
 0x450   :  { %v581_v19 = vpop.f32.mrb[12].mxu0 }
 0x451   :  { %v587_v20 = vpack.c.bf16 %v581_v19, %v535_v15  ;;  %v1019_v21 = vpop.f32.mrb[13].mxu0 }
 0x452   :  { %v584_v22 = vpop.f32.mrb[14].mxu0 }
 0x453   :  { %588 = vst.msk [vmem:[#allocation2] sm:$0xff] %vm376_vm2, %v587_v20  ;;  %v1020_v23 = vpop.f32.mrb[15].mxu0 }
 0x454   :  { %v633_v24 = vpop.f32.mrb[12].mxu1 }
 0x455   :  { %v634_v25 = vadd.f32 %v633_v24, %v1530_v41  ;;  %v1025_v26 = vpop.f32.mrb[13].mxu1 }
 0x456   :  { %v636_v27 = vpop.f32.mrb[14].mxu1 }
 0x457   :  { %v1026_v28 = vpop.f32.mrb[15].mxu1  ;;  %v689_v29 = vsel %vm469_vm4, %v634_v25, -inf }
 0x458   :  { %690 = vmax.xlane.f32.xlu0 %v689_v29  ;;  %v683_v30 = vpop.f32.mrb[16].mxu0 }
 0x459   :  { %v684_v31 = vadd.f32 %v683_v30, %v1530_v41  ;;  %v1031_v32 = vpop.f32.mrb[17].mxu0 }
 0x45a   :  { %v686_v33 = vpop.f32.mrb[18].mxu0 }
 0x45b   :  { %v1032_v34 = vpop.f32.mrb[19].mxu0  ;;  %v692_v36 = vsel %vm469_vm4, %v684_v31, -inf }
 0x45c   :  { %693 = vmax.xlane.f32.xlu1 %v692_v36 }
 0x46d   :  { %761 = vrot.lane.b32.xlu1 %v1524_v39, %s1293_s7 }
 0x4e5   :  { %v691_v37 = vpop.xlane.xlu0 %690 }
 0x4e6   :  { %v695_v38 = vsub.f32 %v634_v25, %v691_v37 }
 0x4e8   :  { %v697_v40 = vmul.f32 1.442695, %v695_v38 }
 0x4e9   :  { %v694_v42 = vpop.xlane.xlu1 %693 }
 0x4ea   :  { %1088 = vpow2.f32 %v697_v40  ;;  %v696_v43 = vsub.f32 %v684_v31, %v694_v42 }
 0x4ec   :  { %v699_v44 = vmul.f32 1.442695, %v696_v43 }
 0x4ed   :  { %v762_v45 = vpop.permute.xlu1 %761 }
 0x4ee   :  { %1090 = vpow2.f32 %v699_v44  ;;  %v767_v41 = vsel %vm497_vm3, %v762_v45, 0 }
 0x4ef   :  { %1040 = vmatpush3.bf16.msra.mxu0 %v767_v41 }
 0x4f4   :  { %v1089_v46 = vpop.eup %1088 }
 0x4f5   :  { %v701_v47 = vsel %vm469_vm4, %v1089_v46, 0.0 }
 0x4f6   :  { %702 = vadd.xlane.f32.xlu0 %v701_v47 }
 0x4f8   :  { %v1091_v48 = vpop.eup %1090 }
 0x4f9   :  { %v704_v49 = vsel %vm469_vm4, %v1091_v48, 0.0 }
 0x4fa   :  { %705 = vadd.xlane.f32.xlu0 %v704_v49 }
 0x510   :  { %713 = vrot.lane.b32.xlu0 %v1520_v35, %s1293_s7 }
 0x583   :  { %v703_v39 = vpop.xlane.xlu0 %702 }
 0x584   :  { %1092 = vrcp.f32 %v703_v39 }
 0x587   :  { %v706_v50 = vpop.xlane.xlu0 %705 }
 0x588   :  { %1094 = vrcp.f32 %v706_v50 }
 0x58b   :  { %v714_v51 = vpop.permute.xlu0 %713 }
 0x58c   :  { %v719_v52 = vsel %vm497_vm3, %v714_v51, 0 }
 0x58d   :  { %1034 = vmatpush3.bf16.msra.mxu1 %v719_v52 }
 0x58e   :  { %v1093_v53 = vpop.eup %1092  ;;  %1045 = vmatprep.subr.bf16.mxu1 %v1291_v0 }
 0x58f   :  { %v709_v54 = vmul.f32 %v1093_v53, %v1089_v46 }
 0x591   :  { %v711_v55 = vpack.c.bf16 %v709_v54, %v709_v54 }
 0x592   :  { %v1095_v56 = vpop.eup %1094 }
 0x593   :  { %v710_v57 = vmul.f32 %v1095_v56, %v1091_v48  ;;  %1036 = vmatmul.mubr.msk.bf16.vlgmr.msra.gmra.mrb[16].mxu1 %vm469_vm4, %v711_v55 }
 0x594   :  { %1049 = vmatprep.mubr.msk.bf16.mxu1 %vm1292_vm0, %v1291_v0  ;;  %1046 = vmatpush3.bf16.msra.mxu1 %v1078_v58 }
 0x595   :  { %v712_v35 = vpack.c.bf16 %v710_v57, %v710_v57  ;;  %1047 = vmatprep.subr.bf16.mxu1 %v1291_v0  ;;  %v935_v0 = vld [vmem:[%s1611_s11] ss:$0 sm:$0xff] }
 0x597   :  { %1042 = vmatmul.mubr.msk.bf16.vlgmr.msra.gmra.mrb[20].mxu0 %vm469_vm4, %v712_v35 }
 0x598   :  { %1048 = vmatpush3.bf16.msra.mxu1 %v1079_v59 }
 0x666   :  { %v755_v60 = vpop.f32.mrb[16].mxu1 }
 0x667   :  { %v1037_v61 = vpop.f32.mrb[17].mxu1 }
 0x668   :  { %v758_v62 = vpop.f32.mrb[18].mxu1 }
 0x669   :  { %v1038_v63 = vpop.f32.mrb[19].mxu1 }
 0x66a   :  { %v803_v1 = vpop.f32.mrb[20].mxu0 }
 0x66b   :  { %v809_v2 = vpack.c.bf16 %v803_v1, %v755_v60  ;;  %v1043_v3 = vpop.f32.mrb[21].mxu0 }
 0x66c   :  { %v806_v4 = vpop.f32.mrb[22].mxu0 }
 0x66d   :  { %811 = vrot.lane.b32.xlu1 %v809_v2, %s1294_s2  ;;  %v1044_v5 = vpop.f32.mrb[23].mxu0 }
 0x6df   :  { %v812_v6 = vpop.permute.xlu1 %811 }
 0x6e0   :  { %815 = vst.msk [vmem:[#allocation2] sm:$0xff] %vm814_vm5, %v812_v6 }
 0x6e7   :  { %v816_v7 = vld [vmem:[#allocation2] sm:$0xff] }
 0x6e8   :  { %1050 = vmatmul.mubr.msk.bf16.vlgmr.msra.gmra.mrb[20].mxu1 %vm168_vm1, %v816_v7 }
 0x7bb   :  { %v877_v8 = vpop.f32.mrb[20].mxu1 }
 0x7bc   :  { %v878_v9 = vadd.f32 %v935_v0, %v877_v8  ;;  %v1051_v10 = vpop.f32.mrb[21].mxu1 }
 0x7bd   :  { %v880_v11 = vpop.f32.mrb[22].mxu1 }
 0x7be   :  { %884 = vst.msk [vmem:[#allocation15] sm:$0xff] %vm168_vm1, %v878_v9  ;;  %v881_v12 = vadd.f32 %v935_v0, %v880_v11  ;;  %v1052_v13 = vpop.f32.mrb[23].mxu1 }
 0x7c0   :  { %885 = vst.msk [vmem:[#allocation15 + $0x8] sm:$0xff] %vm168_vm1, %v881_v12 }
 0x7c1   :  { %1261 = shalt.err (!%p1258_p4)
}
 0x7c2   :  { %s1262_s27 = scalar_lea.hbm %s1612_s12, 256 }
 0x7c3   :  { %p1263_p5 = scmp.ne.s32.totalorder %s1612_s12, %s1262_s27  ;;  %p1266_p6 = scmp.lt.u32.totalorder %s1262_s27, %s1612_s12 }
 0x7c5   :  { %p1268_p7 = pnand %p1266_p6, %p1263_p5 }
 0x7c7   :  { %1271 = shalt.err (!%p1268_p7)
}
 0x7c8   :  { %s1296_s22 = smov 128   ;;  %s1297_s4 = smov 8  }
 0x7c9   :  { %897 = dma.vmem_to_hbm [thread:$0]  %s892_s3, 256, %s1612_s12, [#allocation5], %s1296_s22, %s1296_s22, %s1297_s4  }
 0x7ca   :  { %1280 = dma.done.wait [#allocation5], 256  }
 0x7cb   :  { %1281 = vsyncadd [#allocation5], 4294967040 }
 0x7cc   :  { %901 = vsyncpa [#allocation4], 1 }
 0x7cd   :  { %902 = vsyncpa [#allocation7], 1 }
 0x7ce   :  { %903 = vsyncpa [#allocation10], 1 }
 0x7cf   :  { %904 = vsyncpa [#allocation13], 1 }
 0x7d0   :  { %905 = vsyncpa [#allocation5], 1 }

</bundles_post_ra>
